<compile_context>
chip_gen: v7x
topology: tpu7x:2x2x1
jax: 0.10.0
libtpu: 0.0.40
codegen_flags: <defaults>
</compile_context>

<pallas_src>
import jax
import jax.numpy as jnp
from jax.experimental import pallas as pl
from jax.experimental.pallas import tpu as pltpu

DIMS = [128, 256, 512, 1024]
DEPTHS = [3, 3, 27, 3]
LN_EPS = 1e-6
LAYER_SCALE = 1e-6
ACT_DTYPE = jnp.bfloat16


def _vmem_budget_bytes():
    # 96 MiB on 128-MiB-VMEM chips (v5e/v6e); conservative 48 MiB otherwise
    # (v7x has 64 MiB per TensorCore).  Fallback is the conservative choice.
    try:
        cap = pltpu.get_tpu_info().vmem_capacity_bytes
    except Exception:
        cap = 64 * 1024 * 1024
    if cap >= 100 * 1024 * 1024:
        return 96 * 1024 * 1024
    return 48 * 1024 * 1024


VMEM_LIMIT = _vmem_budget_bytes()
LARGE_VMEM = VMEM_LIMIT >= 96 * 1024 * 1024


def _round_up(x, m):
    return ((x + m - 1) // m) * m


def _row_tile(M, cap=512):
    return cap if M > cap else _round_up(M, 8)


# ----------------------------------------------------------------------------
# in-kernel helpers
# ----------------------------------------------------------------------------
def _gelu_tanh(x):
    # tanh-GELU: the tanh runs on the EUP (free slot next to the MXU/VPU work).
    c = 0.7978845608028654
    return 0.5 * x * (1.0 + jnp.tanh(c * (x + 0.044715 * x * x * x)))


def _ln(x, g, b):
    mu = jnp.mean(x, axis=-1, keepdims=True)
    var = jnp.mean((x - mu) ** 2, axis=-1, keepdims=True)
    return (x - mu) * jax.lax.rsqrt(var + LN_EPS) * g + b


# ----------------------------------------------------------------------------
# stem: Conv2d(1,128,4,4) as patchify-matmul, fused with LayerNorm2d(128)
# ----------------------------------------------------------------------------
def _stem_kernel(x_ref, w_ref, b_ref, g_ref, be_ref, o_ref):
    y = jnp.dot(x_ref[...], w_ref[...],
                preferred_element_type=jnp.float32) + b_ref[...]
    o_ref[...] = _ln(y, g_ref[...], be_ref[...]).astype(o_ref.dtype)


@jax.jit
def stem_conv_ln(patches, w, b, g, be):
    M, K = patches.shape
    N = w.shape[1]
    TM = _row_tile(M)
    Mp = _round_up(M, TM)
    if Mp != M:
        patches = jnp.pad(patches, ((0, Mp - M), (0, 0)))
    out = pl.pallas_call(
        _stem_kernel,
        out_shape=jax.ShapeDtypeStruct((Mp, N), ACT_DTYPE),
        grid_spec=pltpu.PrefetchScalarGridSpec(
            num_scalar_prefetch=0,
            grid=(Mp // TM,),
            in_specs=[
                pl.BlockSpec((TM, K), lambda m: (m, 0)),
                pl.BlockSpec((K, N), lambda m: (0, 0)),
                pl.BlockSpec((1, N), lambda m: (0, 0)),
                pl.BlockSpec((1, N), lambda m: (0, 0)),
                pl.BlockSpec((1, N), lambda m: (0, 0)),
            ],
            out_specs=pl.BlockSpec((TM, N), lambda m: (m, 0)),
        ),
        compiler_params=pltpu.CompilerParams(
            dimension_semantics=("parallel",), vmem_limit_bytes=VMEM_LIMIT),
    )(patches, w, b, g, be)
    return out[:M] if Mp != M else out


# ----------------------------------------------------------------------------
# downsample: LayerNorm2d(C) fused with Conv2d(C, 2C, 2, 2) (patchify matmul)
# ----------------------------------------------------------------------------
def _downsample_kernel(x_ref, g_ref, be_ref, w_ref, b_ref, o_ref):
    C = g_ref.shape[-1]
    g = g_ref[...]
    be = be_ref[...]
    acc = jnp.zeros(o_ref.shape, jnp.float32)
    for j in range(4):                                  # 4 pixels of the 2x2 patch
        xj = x_ref[:, j * C:(j + 1) * C].astype(jnp.float32)
        xn = _ln(xj, g, be)                             # per-pixel LayerNorm over C
        acc = acc + jnp.dot(xn.astype(jnp.bfloat16), w_ref[j * C:(j + 1) * C, :],
                            preferred_element_type=jnp.float32)
    o_ref[...] = (acc + b_ref[...]).astype(o_ref.dtype)


@jax.jit
def downsample_ln_conv(patches, g, be, w, b):
    M, K4 = patches.shape
    Nout = w.shape[1]
    TM = _row_tile(M)
    Mp = _round_up(M, TM)
    if Mp != M:
        patches = jnp.pad(patches, ((0, Mp - M), (0, 0)))
    C = K4 // 4
    out = pl.pallas_call(
        _downsample_kernel,
        out_shape=jax.ShapeDtypeStruct((Mp, Nout), ACT_DTYPE),
        grid_spec=pltpu.PrefetchScalarGridSpec(
            num_scalar_prefetch=0,
            grid=(Mp // TM,),
            in_specs=[
                pl.BlockSpec((TM, K4), lambda m: (m, 0)),
                pl.BlockSpec((1, C), lambda m: (0, 0)),
                pl.BlockSpec((1, C), lambda m: (0, 0)),
                pl.BlockSpec((K4, Nout), lambda m: (0, 0)),
                pl.BlockSpec((1, Nout), lambda m: (0, 0)),
            ],
            out_specs=pl.BlockSpec((TM, Nout), lambda m: (m, 0)),
        ),
        compiler_params=pltpu.CompilerParams(
            dimension_semantics=("parallel",), vmem_limit_bytes=VMEM_LIMIT),
    )(patches, g, be, w, b)
    return out[:M] if Mp != M else out


# ----------------------------------------------------------------------------
# CNBlock depthwise 7x7 conv; pad=3 halo folded in-kernel via a VMEM scratch,
# accumulation kept in registers; grid over (image, 128-channel tiles)
# ----------------------------------------------------------------------------
def _dwconv7_kernel(x_ref, w_ref, b_ref, o_ref, xpad_ref):
    _, H, W, TC = o_ref.shape
    # zero-fill the halo'd scratch, then write the interior (all VMEM traffic).
    xpad_ref[...] = jnp.zeros_like(xpad_ref)
    xpad_ref[:, 3:3 + H, 3:3 + W, :] = x_ref[...].astype(jnp.float32)

    wt = w_ref[...].astype(jnp.float32)                 # (49, TC)
    acc = jnp.zeros((1, H, W, TC), jnp.float32)
    for kw in range(7):
        xs = xpad_ref[:, :, kw:kw + W, :]               # one sublane-shift per kw
        for kh in range(7):                             # H shifts are major-axis slices
            acc = acc + xs[:, kh:kh + H, :, :] * wt[kh * 7 + kw]
    o_ref[...] = (acc + b_ref[...].astype(jnp.float32)).astype(o_ref.dtype)


@jax.jit
def dwconv7(x, w, b):
    N, H, W, C = x.shape
    TC = 128
    return pl.pallas_call(
        _dwconv7_kernel,
        out_shape=jax.ShapeDtypeStruct((N, H, W, C), ACT_DTYPE),
        grid_spec=pltpu.PrefetchScalarGridSpec(
            num_scalar_prefetch=0,
            grid=(N, C // TC),
            in_specs=[
                pl.BlockSpec((1, H, W, TC), lambda n, c: (n, 0, 0, c)),
                pl.BlockSpec((49, TC), lambda n, c: (0, c)),
                pl.BlockSpec((1, TC), lambda n, c: (0, c)),
            ],
            out_specs=pl.BlockSpec((1, H, W, TC), lambda n, c: (n, 0, 0, c)),
            scratch_shapes=[pltpu.VMEM((1, H + 6, W + 6, TC), jnp.float32)],
        ),
        compiler_params=pltpu.CompilerParams(
            dimension_semantics=("parallel", "parallel"),
            vmem_limit_bytes=VMEM_LIMIT),
    )(x, w, b)


# ----------------------------------------------------------------------------
# CNBlock LN + Linear(C,4C) + GELU + Linear(4C,C) + layer_scale + residual,
# tiled over rows (parallel) and the 4C hidden dim (arbitrary, accumulated)
# ----------------------------------------------------------------------------
def _cnblock_mlp_kernel(y_ref, res_ref, g_ref, be_ref, w1_ref, b1_ref, w2_ref,
                        b2_ref, gamma_ref, o_ref, yn_ref, acc_ref):
    t = pl.program_id(1)

    @pl.when(t == 0)
    def _():
        y = y_ref[...].astype(jnp.float32)
        yn_ref[...] = _ln(y, g_ref[...], be_ref[...]).astype(yn_ref.dtype)
        acc_ref[...] = jnp.zeros_like(acc_ref)

    h = jnp.dot(yn_ref[...], w1_ref[...],
                preferred_element_type=jnp.float32) + b1_ref[...]
    h = _gelu_tanh(h)
    acc_ref[...] += jnp.dot(h.astype(jnp.bfloat16), w2_ref[...],
                            preferred_element_type=jnp.float32)

    @pl.when(t == pl.num_programs(1) - 1)
    def _():
        z = acc_ref[...] + b2_ref[...]
        o_ref[...] = (res_ref[...].astype(jnp.float32)
                      + gamma_ref[...] * z).astype(o_ref.dtype)


@jax.jit
def cnblock_mlp(y, res, g, be, w1, b1, w2, b2, gamma):
    M, C = y.shape
    Hdim = w1.shape[1]
    TM = _row_tile(M)
    Mp = _round_up(M, TM)
    if Mp != M:
        y = jnp.pad(y, ((0, Mp - M), (0, 0)))
        res = jnp.pad(res, ((0, Mp - M), (0, 0)))
    if LARGE_VMEM:
        HT = Hdim                                   # w1/w2 grid-invariant, fetched once
    else:
        HT = Hdim if Hdim <= 2048 else 2048         # v7x: halve the re-stream
    out = pl.pallas_call(
        _cnblock_mlp_kernel,
        out_shape=jax.ShapeDtypeStruct((Mp, C), ACT_DTYPE),
        grid_spec=pltpu.PrefetchScalarGridSpec(
            num_scalar_prefetch=0,
            grid=(Mp // TM, Hdim // HT),
            in_specs=[
                pl.BlockSpec((TM, C), lambda m, t: (m, 0)),     # dwconv output (bf16)
                pl.BlockSpec((TM, C), lambda m, t: (m, 0)),     # residual (bf16)
                pl.BlockSpec((1, C), lambda m, t: (0, 0)),      # ln gamma
                pl.BlockSpec((1, C), lambda m, t: (0, 0)),      # ln beta
                pl.BlockSpec((C, HT), lambda m, t: (0, t)),     # w1 tile (bf16)
                pl.BlockSpec((1, HT), lambda m, t: (0, t)),     # b1 tile
                pl.BlockSpec((HT, C), lambda m, t: (t, 0)),     # w2 tile (bf16)
                pl.BlockSpec((1, C), lambda m, t: (0, 0)),      # b2
                pl.BlockSpec((1, C), lambda m, t: (0, 0)),      # layer scale
            ],
            out_specs=pl.BlockSpec((TM, C), lambda m, t: (m, 0)),
            scratch_shapes=[pltpu.VMEM((TM, C), jnp.bfloat16),   # LN(y), MXU-ready
                            pltpu.VMEM((TM, C), jnp.float32)],   # f32 accumulator
        ),
        compiler_params=pltpu.CompilerParams(
            dimension_semantics=("parallel", "arbitrary"),
            vmem_limit_bytes=VMEM_LIMIT),
    )(y, res, g, be, w1, b1, w2, b2, gamma)
    return out[:M] if Mp != M else out


# ----------------------------------------------------------------------------
# head: mean over num_images + Linear(1024 -> 3)
# ----------------------------------------------------------------------------
def _head_kernel(f_ref, w_ref, b_ref, o_ref):
    f = jnp.mean(f_ref[...].astype(jnp.float32), axis=1)   # mean over num_images
    o_ref[...] = (jnp.dot(f, w_ref[...], preferred_element_type=jnp.float32)
                  + b_ref[...]).astype(o_ref.dtype)


@jax.jit
def head_fc(feats, w, b):
    B = feats.shape[0]
    return pl.pallas_call(
        _head_kernel,
        out_shape=jax.ShapeDtypeStruct((B, w.shape[1]), jnp.float32),
    )(feats, w, b)


# ----------------------------------------------------------------------------
# model blocks (glue in plain JAX, compute in the kernels above)
# ----------------------------------------------------------------------------
def cn_block(x, p):
    N, H, W, C = x.shape
    y = dwconv7(x, p["dw_w"], p["dw_b"])                        # halo folded in-kernel
    M = N * H * W
    out = cnblock_mlp(y.reshape(M, C), x.reshape(M, C),
                      p["ln_g"], p["ln_b"], p["w1"], p["b1"],
                      p["w2"], p["b2"], p["gamma"])
    return out.reshape(N, H, W, C)


def downsample_layer(x, p):
    N, H, W, C = x.shape
    patches = (x.reshape(N, H // 2, 2, W // 2, 2, C)
               .transpose(0, 1, 3, 2, 4, 5)
               .reshape(N * (H // 2) * (W // 2), 4 * C))
    y = downsample_ln_conv(patches, p["ln_g"], p["ln_b"], p["w"], p["b"])
    return y.reshape(N, H // 2, W // 2, 2 * C)


def oct_convnext_c_forward(images, params):
    # images: (batch, num_images, 1, H, W)  -- matches the PyTorch NCHW input
    B, NI, Cin, H, W = images.shape
    x = images.reshape(B * NI, Cin, H, W).astype(ACT_DTYPE)     # bf16 activation chain
    x = jnp.transpose(x, (0, 2, 3, 1))                          # NHWC
    N = B * NI

    # stem: Conv2d(1, 128, k=4, s=4) + LayerNorm2d(128), fused
    Hs, Ws = H // 4, W // 4
    patches = (x.reshape(N, Hs, 4, Ws, 4, Cin)
               .transpose(0, 1, 3, 2, 4, 5)
               .reshape(N * Hs * Ws, 16 * Cin))
    y = stem_conv_ln(patches, params["stem_w"], params["stem_b"],
                     params["stem_ln_g"], params["stem_ln_b"])
    x = y.reshape(N, Hs, Ws, DIMS[0])

    for s in range(4):
        for bp in params["stages"][s]:
            x = cn_block(x, bp)
        if s < 3:
            x = downsample_layer(x, params["down"][s])

    feats = jnp.mean(x.astype(jnp.float32), axis=(1, 2))        # AdaptiveAvgPool2d(1)
    feats = feats.reshape(B, NI, feats.shape[-1])               # (B, num_images, 1024)
    return head_fc(feats, params["fc_w"], params["fc_b"])       # mean over images + fc


# ----------------------------------------------------------------------------
# deterministic parameter init (shapes follow convnext_base with modified stem)
# big matmul weights are stored bf16 (MXU inputs); per-channel params f32
# ----------------------------------------------------------------------------
def init_params(key):
    std = 0.02
    keys = [key]

    def nxt():
        keys[0], sub = jax.random.split(keys[0])
        return sub

    p = {
        "stem_w": (jax.random.normal(nxt(), (16, DIMS[0]), jnp.float32)
                   * std).astype(jnp.bfloat16),
        "stem_b": jnp.zeros((1, DIMS[0]), jnp.float32),
        "stem_ln_g": jnp.ones((1, DIMS[0]), jnp.float32),
        "stem_ln_b": jnp.zeros((1, DIMS[0]), jnp.float32),
        "stages": [],
        "down": [],
    }
    for dim, depth in zip(DIMS, DEPTHS):
        blocks = []
        for _ in range(depth):
            blocks.append(dict(
                dw_w=jax.random.normal(nxt(), (49, dim), jnp.float32) * std,
                dw_b=jnp.zeros((1, dim), jnp.float32),
                ln_g=jnp.ones((1, dim), jnp.float32),
                ln_b=jnp.zeros((1, dim), jnp.float32),
                w1=(jax.random.normal(nxt(), (dim, 4 * dim), jnp.float32)
                    * std).astype(jnp.bfloat16),
                b1=jnp.zeros((1, 4 * dim), jnp.float32),
                w2=(jax.random.normal(nxt(), (4 * dim, dim), jnp.float32)
                    * std).astype(jnp.bfloat16),
                b2=jnp.zeros((1, dim), jnp.float32),
                gamma=jnp.full((1, dim), LAYER_SCALE, jnp.float32),
            ))
        p["stages"].append(blocks)
    for s in range(3):
        cin, cout = DIMS[s], DIMS[s + 1]
        p["down"].append(dict(
            ln_g=jnp.ones((1, cin), jnp.float32),
            ln_b=jnp.zeros((1, cin), jnp.float32),
            w=(jax.random.normal(nxt(), (4 * cin, cout), jnp.float32)
               * std).astype(jnp.bfloat16),
            b=jnp.zeros((1, cout), jnp.float32),
        ))
    p["fc_w"] = jax.random.normal(nxt(), (DIMS[-1], 3), jnp.float32) * std
    p["fc_b"] = jnp.zeros((1, 3), jnp.float32)
    return p


if __name__ == "__main__":
    key = jax.random.PRNGKey(0)
    pkey, xkey = jax.random.split(key)
    params = init_params(pkey)

    # (batch=2, num_images=2, channels=1, H=32, W=32): smallest clean size
    # (divisible by 4 * 2 * 2 * 2 so every stage has valid spatial extent).
    images = jax.random.normal(xkey, (2, 2, 1, 32, 32), jnp.float32)

    fwd = jax.jit(oct_convnext_c_forward)
    out = fwd(images, params)
    out = jax.block_until_ready(out)
    assert out.shape == (2, 3), out.shape
    print("KERNEL_OK")
</pallas_src>

<mosaic_0001>
module attributes {stable_mosaic.version = 11 : i64} {
  func.func @_stem_kernel(%arg0: i32, %arg1: memref<256x16xbf16, #tpu.memory_space<vmem>>, %arg2: memref<16x128xbf16, #tpu.memory_space<vmem>>, %arg3: memref<1x128xf32, #tpu.memory_space<vmem>>, %arg4: memref<1x128xf32, #tpu.memory_space<vmem>>, %arg5: memref<1x128xf32, #tpu.memory_space<vmem>>, %arg6: memref<256x128xbf16, #tpu.memory_space<vmem>>) attributes {dimension_semantics = [#tpu.dimension_semantics<parallel>], iteration_bounds = array<i64: 1>, scalar_prefetch = 0 : i64, scratch_operands = 0 : i64, tpu.core_type = #tpu.core_type<tc>, window_params = [{transform_indices = @transform_0, window_bounds = array<i64: 256, 16>}, {pipeline_mode = #tpu.pipeline_mode<synchronous>, transform_indices = @transform_1, window_bounds = array<i64: 16, 128>}, {pipeline_mode = #tpu.pipeline_mode<synchronous>, transform_indices = @transform_2, window_bounds = array<i64: 1, 128>}, {pipeline_mode = #tpu.pipeline_mode<synchronous>, transform_indices = @transform_3, window_bounds = array<i64: 1, 128>}, {pipeline_mode = #tpu.pipeline_mode<synchronous>, transform_indices = @transform_4, window_bounds = array<i64: 1, 128>}, {transform_indices = @transform_5, window_bounds = array<i64: 256, 128>}]} {
    %c0 = arith.constant 0 : index
    %c0_0 = arith.constant 0 : index
    %0 = vector.load %arg1[%c0, %c0_0] : memref<256x16xbf16, #tpu.memory_space<vmem>>, vector<256x16xbf16>
    %c0_1 = arith.constant 0 : index
    %c0_2 = arith.constant 0 : index
    %1 = vector.load %arg2[%c0_1, %c0_2] : memref<16x128xbf16, #tpu.memory_space<vmem>>, vector<16x128xbf16>
    %cst = arith.constant dense<0.000000e+00> : vector<256x128xf32>
    %2 = tpu.matmul %0, %1, %cst {dimension_numbers = #tpu.dot_dimension_numbers<[1], [0], [0], [1], [0, 0, 1, 1], [], []>} : vector<256x16xbf16>, vector<16x128xbf16>, vector<256x128xf32> -> vector<256x128xf32>
    %c0_3 = arith.constant 0 : index
    %c0_4 = arith.constant 0 : index
    %3 = vector.load %arg3[%c0_3, %c0_4] : memref<1x128xf32, #tpu.memory_space<vmem>>, vector<1x128xf32>
    %4 = vector.broadcast %3 : vector<1x128xf32> to vector<256x128xf32>
    %5 = arith.addf %2, %4 : vector<256x128xf32>
    %c0_5 = arith.constant 0 : index
    %c0_6 = arith.constant 0 : index
    %6 = vector.load %arg4[%c0_5, %c0_6] : memref<1x128xf32, #tpu.memory_space<vmem>>, vector<1x128xf32>
    %c0_7 = arith.constant 0 : index
    %c0_8 = arith.constant 0 : index
    %7 = vector.load %arg5[%c0_7, %c0_8] : memref<1x128xf32, #tpu.memory_space<vmem>>, vector<1x128xf32>
    %cst_9 = arith.constant dense<0.000000e+00> : vector<256xf32>
    %8 = vector.multi_reduction <add>, %5, %cst_9 [1] : vector<256x128xf32> to vector<256xf32>
    %9 = vector.shape_cast %8 : vector<256xf32> to vector<256x1xf32>
    %cst_10 = arith.constant 1.280000e+02 : f32
    %10 = vector.broadcast %cst_10 : f32 to vector<256x1xf32>
    %11 = arith.divf %9, %10 : vector<256x1xf32>
    %12 = vector.broadcast %11 : vector<256x1xf32> to vector<256x128xf32>
    %13 = arith.subf %5, %12 : vector<256x128xf32>
    %14 = arith.mulf %13, %13 : vector<256x128xf32>
    %cst_11 = arith.constant dense<0.000000e+00> : vector<256xf32>
    %15 = vector.multi_reduction <add>, %14, %cst_11 [1] : vector<256x128xf32> to vector<256xf32>
    %16 = vector.shape_cast %15 : vector<256xf32> to vector<256x1xf32>
    %cst_12 = arith.constant 1.280000e+02 : f32
    %17 = vector.broadcast %cst_12 : f32 to vector<256x1xf32>
    %18 = arith.divf %16, %17 : vector<256x1xf32>
    %19 = vector.broadcast %11 : vector<256x1xf32> to vector<256x128xf32>
    %20 = arith.subf %5, %19 : vector<256x128xf32>
    %cst_13 = arith.constant 9.99999997E-7 : f32
    %21 = vector.broadcast %cst_13 : f32 to vector<256x1xf32>
    %22 = arith.addf %18, %21 : vector<256x1xf32>
    %23 = math.rsqrt %22 : vector<256x1xf32>
    %24 = vector.broadcast %23 : vector<256x1xf32> to vector<256x128xf32>
    %25 = arith.mulf %20, %24 : vector<256x128xf32>
    %26 = vector.broadcast %6 : vector<1x128xf32> to vector<256x128xf32>
    %27 = arith.mulf %25, %26 : vector<256x128xf32>
    %28 = vector.broadcast %7 : vector<1x128xf32> to vector<256x128xf32>
    %29 = arith.addf %27, %28 : vector<256x128xf32>
    %30 = arith.truncf %29 : vector<256x128xf32> to vector<256x128xbf16>
    %c0_14 = arith.constant 0 : index
    %c0_15 = arith.constant 0 : index
    %31 = vector.load %arg6[%c0_14, %c0_15] : memref<256x128xbf16, #tpu.memory_space<vmem>>, vector<256x128xbf16>
    tpu.vector_store %arg6[%c0_14, %c0_15], %30 {strides = array<i32>} : memref<256x128xbf16, #tpu.memory_space<vmem>>, vector<256x128xbf16>,
    return
  }
  func.func @transform_0(%arg0: i32) -> (i32, i32) {
    %c0_i32 = arith.constant 0 : i32
    %c0_i32_0 = arith.constant 0 : i32
    return %arg0, %c0_i32 : i32, i32
  }
  func.func @transform_1(%arg0: i32) -> (i32, i32) {
    %c0_i32 = arith.constant 0 : i32
    %c0_i32_0 = arith.constant 0 : i32
    %c0_i32_1 = arith.constant 0 : i32
    return %c0_i32, %c0_i32_0 : i32, i32
  }
  func.func @transform_2(%arg0: i32) -> (i32, i32) {
    %c0_i32 = arith.constant 0 : i32
    %c0_i32_0 = arith.constant 0 : i32
    %c0_i32_1 = arith.constant 0 : i32
    return %c0_i32, %c0_i32_0 : i32, i32
  }
  func.func @transform_3(%arg0: i32) -> (i32, i32) {
    %c0_i32 = arith.constant 0 : i32
    %c0_i32_0 = arith.constant 0 : i32
    %c0_i32_1 = arith.constant 0 : i32
    return %c0_i32, %c0_i32_0 : i32, i32
  }
  func.func @transform_4(%arg0: i32) -> (i32, i32) {
    %c0_i32 = arith.constant 0 : i32
    %c0_i32_0 = arith.constant 0 : i32
    %c0_i32_1 = arith.constant 0 : i32
    return %c0_i32, %c0_i32_0 : i32, i32
  }
  func.func @transform_5(%arg0: i32) -> (i32, i32) {
    %c0_i32 = arith.constant 0 : i32
    %c0_i32_0 = arith.constant 0 : i32
    return %arg0, %c0_i32 : i32, i32
  }
}

</mosaic_0001>

<bundles_post_ra>
// kernel: stem_conv_ln.1
= control target key start
LH: loop header
LB: loop body
LE: loop exit
PB: predicated region body
PF: predicated region fallthrough
CT: control target
= control target key end

     0   :  { %vm149_vm0 = vcmask 130048   ;;  %s1833_s0 = inlined_call_operand.vmem [shape: bf16[256,16], index: 0, kind: input, shape index: {}]   ;;  %s1834_s1 = inlined_call_operand.vmem [shape: bf16[16,128], index: 1, kind: input, shape index: {}]   ;;  %s1835_s2 = inlined_call_operand.vmem [shape: f32[1,128], index: 2, kind: input, shape index: {}]   ;;  %s1836_s3 = inlined_call_operand.vmem [shape: f32[1,128], index: 3, kind: input, shape index: {}]   ;;  %s1837_s4 = inlined_call_operand.vmem [shape: f32[1,128], index: 4, kind: input, shape index: {}]   ;;  %s1838_s5 = inlined_call_operand.hbm [shape: bf16[256,128], index: 5, kind: output, shape index: {}]  }
   0x1   :  { %v1217_v0 = vld [vmem:[%s1834_s1] sm:$0xff]   ;;  %v1220_v3 = vld [vmem:[%s1833_s0 + $0x8] sm:$0xff]   ;;  %v1222_v5 = vld [vmem:[%s1833_s0 + $0x10] sm:$0xff]  }
   0x2   :  { %v1218_v1 = vld [vmem:[%s1833_s0] sm:$0xff]   ;;  %1178 = vmatprep.subr.bf16.mxu0 %v1217_v0  ;;  %1212 = vmatprep.subr.bf16.mxu1 %v1217_v0  ;;  %v1221_v4 = vld [vmem:[%s1833_s0 + $0x48] sm:$0xff]   ;;  %v1224_v6 = vld [vmem:[%s1833_s0 + $0x50] sm:$0xff]  }
   0x3   :  { %v1219_v2 = vld [vmem:[%s1833_s0 + $0x40] sm:$0xff]   ;;  %1179 = vmatpush3.bf16.msra.mxu0 %v1217_v0  ;;  %1213 = vmatpush3.bf16.msra.mxu1 %v1217_v0  ;;  %v1223_v7 = vld [vmem:[%s1833_s0 + $0x18] sm:$0xff]  }
   0x4   :  { %1180 = vmatprep.mubr.msk.bf16.mxu0 %vm149_vm0, %v1218_v1  ;;  %1196 = vmatprep.mubr.msk.bf16.mxu1 %vm149_vm0, %v1219_v2  ;;  %v1225_v8 = vld [vmem:[%s1833_s0 + $0x58] sm:$0xff]   ;;  %v1226_v9 = vld [vmem:[%s1833_s0 + $0x20] sm:$0xff]  }
   0x5   :  { %v1228_v10 = vld [vmem:[%s1833_s0 + $0x60] sm:$0xff]  }
   0x6   :  { %1181 = vmatmul.mubr.msk.bf16.vlgmr.msra.gmra.mrb[0].mxu0 %vm149_vm0, %v1220_v3  ;;  %1197 = vmatmul.mubr.msk.bf16.vlgmr.msra.gmra.mrb[0].mxu1 %vm149_vm0, %v1221_v4 }
   0x7   :  { %1184 = vmatprep.mubr.msk.bf16.mxu0 %vm149_vm0, %v1222_v5  ;;  %1200 = vmatprep.mubr.msk.bf16.mxu1 %vm149_vm0, %v1224_v6 }
   0xe   :  { %1185 = vmatmul.mubr.msk.bf16.gmra.mrb[4].mxu0 %vm149_vm0, %v1223_v7  ;;  %1201 = vmatmul.mubr.msk.bf16.gmra.mrb[4].mxu1 %vm149_vm0, %v1225_v8 }
   0xf   :  { %1188 = vmatprep.mubr.msk.bf16.mxu0 %vm149_vm0, %v1226_v9  ;;  %1204 = vmatprep.mubr.msk.bf16.mxu1 %vm149_vm0, %v1228_v10 }
  0x10   :  { %10 = vsyncpa [#allocation3], 0  ;;  %v1227_v11 = vld [vmem:[%s1833_s0 + $0x28] sm:$0xff]   ;;  %v1230_v13 = vld [vmem:[%s1833_s0 + $0x30] sm:$0xff]  }
  0x11   :  { %v1229_v12 = vld [vmem:[%s1833_s0 + $0x68] sm:$0xff]   ;;  %v1232_v14 = vld [vmem:[%s1833_s0 + $0x70] sm:$0xff]   ;;  %v1231_v15 = vld [vmem:[%s1833_s0 + $0x38] sm:$0xff]  }
  0x12   :  { %v1233_v16 = vld [vmem:[%s1833_s0 + $0x78] sm:$0xff]   ;;  %v1425_v17 = vld [vmem:[%s1835_s2] ss:$0 sm:$0xff] }
  0x16   :  { %1189 = vmatmul.mubr.msk.bf16.gmra.mrb[8].mxu0 %vm149_vm0, %v1227_v11  ;;  %1205 = vmatmul.mubr.msk.bf16.gmra.mrb[8].mxu1 %vm149_vm0, %v1229_v12 }
  0x17   :  { %1192 = vmatprep.mubr.msk.bf16.mxu0 %vm149_vm0, %v1230_v13  ;;  %1208 = vmatprep.mubr.msk.bf16.mxu1 %vm149_vm0, %v1232_v14 }
  0x1e   :  { %1193 = vmatmul.mubr.msk.bf16.gmra.mrb[12].mxu0 %vm149_vm0, %v1231_v15  ;;  %1209 = vmatmul.mubr.msk.bf16.gmra.mrb[12].mxu1 %vm149_vm0, %v1233_v16 }
  0xd9   :  { %v1182_v18 = vpop.f32.mrb[0].mxu0  ;;  %v1198_v19 = vpop.f32.mrb[0].mxu1 }
  0xda   :  { %v1428_v20 = vadd.f32 %v1182_v18, %v1425_v17  ;;  %v1431_v21 = vadd.f32 %v1198_v19, %v1425_v17  ;;  %v232_v22 = vpop.f32.mrb[1].mxu0  ;;  %v296_v23 = vpop.f32.mrb[1].mxu1 }
  0xdb   :  { %v1183_v24 = vpop.f32.mrb[2].mxu0  ;;  %v1199_v25 = vpop.f32.mrb[2].mxu1  ;;  %v1436_v28 = vadd.f32 %v1425_v17, %v232_v22  ;;  %v1444_v32 = vadd.f32 %v1425_v17, %v296_v23 }
  0xdc   :  { %397 = vadd.xlane.f32.xlu0 %v1431_v21  ;;  %v299_v26 = vpop.f32.mrb[3].mxu1  ;;  %365 = vadd.xlane.f32.xlu1 %v1428_v20  ;;  %v235_v27 = vpop.f32.mrb[3].mxu0  ;;  %v1439_v29 = vadd.f32 %v1183_v24, %v1425_v17  ;;  %v1447_v33 = vadd.f32 %v1199_v25, %v1425_v17 }
  0xdd   :  { %v1452_v40 = vadd.f32 %v1425_v17, %v299_v26  ;;  %v1455_v41 = vadd.f32 %v1425_v17, %v235_v27 }
  0xe0   :  { %367 = vadd.xlane.f32.xlu1 %v1439_v29  ;;  %361 = vadd.xlane.f32.xlu0 %v1436_v28 }
  0xe1   :  { %v1186_v30 = vpop.f32.mrb[4].mxu0  ;;  %v1202_v31 = vpop.f32.mrb[4].mxu1 }
  0xe2   :  { %v248_v34 = vpop.f32.mrb[5].mxu0  ;;  %v312_v35 = vpop.f32.mrb[5].mxu1  ;;  %v1458_v42 = vadd.f32 %v1186_v30, %v1425_v17  ;;  %v1466_v50 = vadd.f32 %v1202_v31, %v1425_v17 }
  0xe3   :  { %v1187_v36 = vpop.f32.mrb[6].mxu0  ;;  %v1203_v37 = vpop.f32.mrb[6].mxu1  ;;  %v1476_v56 = vadd.f32 %v1425_v17, %v248_v34  ;;  %v1484_v0 = vadd.f32 %v1425_v17, %v312_v35 }
  0xe4   :  { %399 = vadd.xlane.f32.xlu1 %v1447_v33  ;;  %393 = vadd.xlane.f32.xlu0 %v1444_v32  ;;  %v251_v38 = vpop.f32.mrb[7].mxu0  ;;  %v315_v39 = vpop.f32.mrb[7].mxu1  ;;  %v1463_v43 = vadd.f32 %v1187_v36, %v1425_v17  ;;  %v1471_v51 = vadd.f32 %v1203_v37, %v1425_v17 }
  0xe5   :  { %v1479_v57 = vadd.f32 %v1425_v17, %v251_v38  ;;  %v1487_v1 = vadd.f32 %v1425_v17, %v315_v39 }
  0xe8   :  { %395 = vadd.xlane.f32.xlu1 %v1452_v40  ;;  %363 = vadd.xlane.f32.xlu0 %v1455_v41 }
  0xe9   :  { %v1190_v44 = vpop.f32.mrb[8].mxu0  ;;  %v1206_v45 = vpop.f32.mrb[8].mxu1 }
  0xea   :  { %v264_v46 = vpop.f32.mrb[9].mxu0  ;;  %v328_v47 = vpop.f32.mrb[9].mxu1  ;;  %v1490_v2 = vadd.f32 %v1190_v44, %v1425_v17  ;;  %v1498_v4 = vadd.f32 %v1206_v45, %v1425_v17 }
  0xeb   :  { %v1191_v48 = vpop.f32.mrb[10].mxu0  ;;  %v1207_v49 = vpop.f32.mrb[10].mxu1  ;;  %v1508_v6 = vadd.f32 %v1425_v17, %v264_v46  ;;  %v1516_v8 = vadd.f32 %v1425_v17, %v328_v47 }
  0xec   :  { %375 = vadd.xlane.f32.xlu1 %v1463_v43  ;;  %373 = vadd.xlane.f32.xlu0 %v1458_v42  ;;  %v267_v52 = vpop.f32.mrb[11].mxu0  ;;  %v331_v53 = vpop.f32.mrb[11].mxu1  ;;  %v1495_v3 = vadd.f32 %v1191_v48, %v1425_v17  ;;  %v1503_v5 = vadd.f32 %v1207_v49, %v1425_v17 }
  0xed   :  { %v1511_v7 = vadd.f32 %v1425_v17, %v267_v52  ;;  %v1519_v9 = vadd.f32 %v1425_v17, %v331_v53 }
  0xf0   :  { %407 = vadd.xlane.f32.xlu1 %v1471_v51  ;;  %405 = vadd.xlane.f32.xlu0 %v1466_v50 }
  0xf1   :  { %v1194_v54 = vpop.f32.mrb[12].mxu0  ;;  %v1210_v55 = vpop.f32.mrb[12].mxu1 }
  0xf2   :  { %v280_v58 = vpop.f32.mrb[13].mxu0  ;;  %v344_v59 = vpop.f32.mrb[13].mxu1  ;;  %v1522_v10 = vadd.f32 %v1194_v54, %v1425_v17  ;;  %v1548_v16 = vadd.f32 %v1210_v55, %v1425_v17 }
  0xf3   :  { %v1195_v60 = vpop.f32.mrb[14].mxu0  ;;  %v1211_v61 = vpop.f32.mrb[14].mxu1  ;;  %v1532_v12 = vadd.f32 %v1425_v17, %v280_v58  ;;  %v1538_v14 = vadd.f32 %v1425_v17, %v344_v59 }
  0xf4   :  { %371 = vadd.xlane.f32.xlu1 %v1479_v57  ;;  %369 = vadd.xlane.f32.xlu0 %v1476_v56  ;;  %v283_v62 = vpop.f32.mrb[15].mxu0  ;;  %v347_v63 = vpop.f32.mrb[15].mxu1  ;;  %v1527_v11 = vadd.f32 %v1195_v60, %v1425_v17  ;;  %v1551_v18 = vadd.f32 %v1211_v61, %v1425_v17 }
  0xf5   :  { %v1535_v13 = vadd.f32 %v1425_v17, %v283_v62  ;;  %v1543_v15 = vadd.f32 %v1425_v17, %v347_v63 }
  0xf8   :  { %403 = vadd.xlane.f32.xlu1 %v1487_v1  ;;  %401 = vadd.xlane.f32.xlu0 %v1484_v0 }
  0xfc   :  { %383 = vadd.xlane.f32.xlu1 %v1495_v3  ;;  %381 = vadd.xlane.f32.xlu0 %v1490_v2 }
 0x100   :  { %415 = vadd.xlane.f32.xlu1 %v1503_v5  ;;  %413 = vadd.xlane.f32.xlu0 %v1498_v4 }
 0x104   :  { %379 = vadd.xlane.f32.xlu1 %v1511_v7  ;;  %377 = vadd.xlane.f32.xlu0 %v1508_v6 }
 0x108   :  { %411 = vadd.xlane.f32.xlu1 %v1519_v9  ;;  %409 = vadd.xlane.f32.xlu0 %v1516_v8 }
 0x10c   :  { %391 = vadd.xlane.f32.xlu1 %v1527_v11  ;;  %389 = vadd.xlane.f32.xlu0 %v1522_v10 }
 0x110   :  { %387 = vadd.xlane.f32.xlu1 %v1535_v13  ;;  %385 = vadd.xlane.f32.xlu0 %v1532_v12 }
 0x114   :  { %419 = vadd.xlane.f32.xlu1 %v1543_v15  ;;  %417 = vadd.xlane.f32.xlu0 %v1538_v14 }
 0x118   :  { %423 = vadd.xlane.f32.xlu1 %v1551_v18  ;;  %421 = vadd.xlane.f32.xlu0 %v1548_v16 }
 0x169   :  { %v398_v19 = vpop.xlane.xlu0 %397  ;;  %v366_v22 = vpop.xlane.xlu1 %365 }
 0x16a   :  { %v444_v23 = vmul.f32 0.0078125, %v398_v19  ;;  %v428_v24 = vmul.f32 0.0078125, %v366_v22 }
 0x16c   :  { %v1556_v25 = vsub.f32 %v1428_v20, %v428_v24  ;;  %v1559_v30 = vsub.f32 %v1431_v21, %v444_v23 }
 0x16d   :  { %v368_v26 = vpop.xlane.xlu1 %367  ;;  %v362_v27 = vpop.xlane.xlu0 %361 }
 0x16e   :  { %v429_v31 = vmul.f32 0.0078125, %v368_v26  ;;  %v426_v34 = vmul.f32 0.0078125, %v362_v27  ;;  %v492_v17 = vmul.f32 %v1556_v25, %v1556_v25  ;;  %v508_v44 = vmul.f32 %v1559_v30, %v1559_v30 }
 0x170   :  { %v1564_v35 = vsub.f32 %v1439_v29, %v429_v31  ;;  %526 = vadd.xlane.f32.xlu0 %v492_v17  ;;  %v1567_v36 = vsub.f32 %v1436_v28, %v426_v34 }
 0x171   :  { %v400_v37 = vpop.xlane.xlu1 %399  ;;  %v394_v20 = vpop.xlane.xlu0 %393 }
 0x172   :  { %v445_v38 = vmul.f32 0.0078125, %v400_v37  ;;  %v442_v39 = vmul.f32 0.0078125, %v394_v20  ;;  %v493_v21 = vmul.f32 %v1564_v35, %v1564_v35  ;;  %v490_v28 = vmul.f32 %v1567_v36, %v1567_v36 }
 0x174   :  { %v1574_v45 = vsub.f32 %v1447_v33, %v445_v38  ;;  %528 = vadd.xlane.f32.xlu1 %v493_v21  ;;  %558 = vadd.xlane.f32.xlu0 %v508_v44  ;;  %v1579_v47 = vsub.f32 %v1444_v32, %v442_v39 }
 0x175   :  { %v396_v29 = vpop.xlane.xlu1 %395  ;;  %v364_v46 = vpop.xlane.xlu0 %363 }
 0x176   :  { %v443_v48 = vmul.f32 0.0078125, %v396_v29  ;;  %v427_v49 = vmul.f32 0.0078125, %v364_v46  ;;  %v509_v52 = vmul.f32 %v1574_v45, %v1574_v45  ;;  %v506_v32 = vmul.f32 %v1579_v47, %v1579_v47 }
 0x178   :  { %v1584_v53 = vsub.f32 %v1455_v41, %v427_v49  ;;  %560 = vadd.xlane.f32.xlu1 %v509_v52  ;;  %522 = vadd.xlane.f32.xlu0 %v490_v28  ;;  %v1587_v33 = vsub.f32 %v1452_v40, %v443_v48 }
 0x179   :  { %v376_v54 = vpop.xlane.xlu1 %375  ;;  %v374_v55 = vpop.xlane.xlu0 %373 }
 0x17a   :  { %v433_v58 = vmul.f32 0.0078125, %v376_v54  ;;  %v432_v59 = vmul.f32 0.0078125, %v374_v55  ;;  %v491_v60 = vmul.f32 %v1584_v53, %v1584_v53  ;;  %v507_v40 = vmul.f32 %v1587_v33, %v1587_v33 }
 0x17c   :  { %v1594_v61 = vsub.f32 %v1458_v42, %v432_v59  ;;  %554 = vadd.xlane.f32.xlu0 %v506_v32  ;;  %524 = vadd.xlane.f32.xlu1 %v491_v60  ;;  %v1599_v63 = vsub.f32 %v1463_v43, %v433_v58 }
 0x17d   :  { %v408_v41 = vpop.xlane.xlu1 %407  ;;  %v406_v62 = vpop.xlane.xlu0 %405 }
 0x17e   :  { %v449_v19 = vmul.f32 0.0078125, %v408_v41  ;;  %v448_v22 = vmul.f32 0.0078125, %v406_v62  ;;  %v496_v23 = vmul.f32 %v1594_v61, %v1594_v61  ;;  %v497_v43 = vmul.f32 %v1599_v63, %v1599_v63 }
 0x180   :  { %v1604_v24 = vsub.f32 %v1466_v50, %v448_v22  ;;  %556 = vadd.xlane.f32.xlu1 %v507_v40  ;;  %534 = vadd.xlane.f32.xlu0 %v496_v23  ;;  %v1607_v42 = vsub.f32 %v1471_v51, %v449_v19 }
 0x181   :  { %v372_v26 = vpop.xlane.xlu1 %371  ;;  %v370_v27 = vpop.xlane.xlu0 %369 }
 0x182   :  { %v431_v31 = vmul.f32 0.0078125, %v372_v26  ;;  %v430_v34 = vmul.f32 0.0078125, %v370_v27  ;;  %v512_v17 = vmul.f32 %v1604_v24, %v1604_v24  ;;  %v513_v51 = vmul.f32 %v1607_v42, %v1607_v42 }
 0x184   :  { %v1614_v37 = vsub.f32 %v1476_v56, %v430_v34  ;;  %536 = vadd.xlane.f32.xlu1 %v497_v43  ;;  %566 = vadd.xlane.f32.xlu0 %v512_v17  ;;  %v1619_v38 = vsub.f32 %v1479_v57, %v431_v31 }
 0x185   :  { %v404_v50 = vpop.xlane.xlu1 %403  ;;  %v402_v20 = vpop.xlane.xlu0 %401 }
 0x186   :  { %v447_v39 = vmul.f32 0.0078125, %v404_v50  ;;  %v446_v21 = vmul.f32 0.0078125, %v402_v20  ;;  %v494_v44 = vmul.f32 %v1614_v37, %v1614_v37  ;;  %v495_v57 = vmul.f32 %v1619_v38, %v1619_v38 }
 0x188   :  { %v1624_v29 = vsub.f32 %v1484_v0, %v446_v21  ;;  %568 = vadd.xlane.f32.xlu1 %v513_v51  ;;  %530 = vadd.xlane.f32.xlu0 %v494_v44  ;;  %v1627_v56 = vsub.f32 %v1487_v1, %v447_v39 }
 0x189   :  { %v384_v46 = vpop.xlane.xlu1 %383  ;;  %v382_v28 = vpop.xlane.xlu0 %381 }
 0x18a   :  { %v437_v48 = vmul.f32 0.0078125, %v384_v46  ;;  %v436_v49 = vmul.f32 0.0078125, %v382_v28  ;;  %v510_v52 = vmul.f32 %v1624_v29, %v1624_v29  ;;  %v511_v1 = vmul.f32 %v1627_v56, %v1627_v56 }
 0x18c   :  { %v1634_v54 = vsub.f32 %v1490_v2, %v436_v49  ;;  %532 = vadd.xlane.f32.xlu1 %v495_v57  ;;  %562 = vadd.xlane.f32.xlu0 %v510_v52  ;;  %v1639_v58 = vsub.f32 %v1495_v3, %v437_v48 }
 0x18d   :  { %v416_v0 = vpop.xlane.xlu1 %415  ;;  %v414_v55 = vpop.xlane.xlu0 %413 }
 0x18e   :  { %v453_v59 = vmul.f32 0.0078125, %v416_v0  ;;  %v452_v32 = vmul.f32 0.0078125, %v414_v55  ;;  %v500_v60 = vmul.f32 %v1634_v54, %v1634_v54  ;;  %v501_v3 = vmul.f32 %v1639_v58, %v1639_v58 }
 0x190   :  { %v1644_v41 = vsub.f32 %v1498_v4, %v452_v32  ;;  %564 = vadd.xlane.f32.xlu1 %v511_v1  ;;  %542 = vadd.xlane.f32.xlu0 %v500_v60  ;;  %v1647_v2 = vsub.f32 %v1503_v5, %v453_v59 }
 0x191   :  { %v380_v62 = vpop.xlane.xlu1 %379  ;;  %v378_v40 = vpop.xlane.xlu0 %377 }
 0x192   :  { %v435_v19 = vmul.f32 0.0078125, %v380_v62  ;;  %v434_v22 = vmul.f32 0.0078125, %v378_v40  ;;  %v516_v23 = vmul.f32 %v1644_v41, %v1644_v41  ;;  %v517_v5 = vmul.f32 %v1647_v2, %v1647_v2 }
 0x194   :  { %v1654_v26 = vsub.f32 %v1508_v6, %v434_v22  ;;  %544 = vadd.xlane.f32.xlu1 %v501_v3  ;;  %574 = vadd.xlane.f32.xlu0 %v516_v23  ;;  %v1659_v31 = vsub.f32 %v1511_v7, %v435_v19 }
 0x195   :  { %v412_v4 = vpop.xlane.xlu1 %411  ;;  %v410_v27 = vpop.xlane.xlu0 %409 }
 0x196   :  { %v451_v34 = vmul.f32 0.0078125, %v412_v4  ;;  %v450_v43 = vmul.f32 0.0078125, %v410_v27  ;;  %v498_v17 = vmul.f32 %v1654_v26, %v1654_v26  ;;  %v499_v7 = vmul.f32 %v1659_v31, %v1659_v31 }
 0x198   :  { %v1664_v50 = vsub.f32 %v1516_v8, %v450_v43  ;;  %576 = vadd.xlane.f32.xlu1 %v517_v5  ;;  %538 = vadd.xlane.f32.xlu0 %v498_v17  ;;  %v1667_v6 = vsub.f32 %v1519_v9, %v451_v34 }
 0x199   :  { %v392_v20 = vpop.xlane.xlu1 %391  ;;  %v390_v51 = vpop.xlane.xlu0 %389 }
 0x19a   :  { %v441_v39 = vmul.f32 0.0078125, %v392_v20  ;;  %v440_v21 = vmul.f32 0.0078125, %v390_v51  ;;  %v514_v44 = vmul.f32 %v1664_v50, %v1664_v50  ;;  %v515_v9 = vmul.f32 %v1667_v6, %v1667_v6 }
 0x19c   :  { %v1674_v46 = vsub.f32 %v1522_v10, %v440_v21  ;;  %540 = vadd.xlane.f32.xlu1 %v499_v7  ;;  %570 = vadd.xlane.f32.xlu0 %v514_v44  ;;  %v1679_v48 = vsub.f32 %v1527_v11, %v441_v39 }
 0x19d   :  { %v388_v8 = vpop.xlane.xlu1 %387  ;;  %v386_v28 = vpop.xlane.xlu0 %385 }
 0x19e   :  { %v439_v49 = vmul.f32 0.0078125, %v388_v8  ;;  %v438_v57 = vmul.f32 0.0078125, %v386_v28  ;;  %v504_v52 = vmul.f32 %v1674_v46, %v1674_v46  ;;  %v505_v11 = vmul.f32 %v1679_v48, %v1679_v48 }
 0x1a0   :  { %v1684_v0 = vsub.f32 %v1532_v12, %v438_v57  ;;  %572 = vadd.xlane.f32.xlu1 %v515_v9  ;;  %550 = vadd.xlane.f32.xlu0 %v504_v52  ;;  %v1687_v10 = vsub.f32 %v1535_v13, %v439_v49 }
 0x1a1   :  { %v420_v55 = vpop.xlane.xlu1 %419  ;;  %v418_v1 = vpop.xlane.xlu0 %417 }
 0x1a2   :  { %v455_v59 = vmul.f32 0.0078125, %v420_v55  ;;  %v454_v32 = vmul.f32 0.0078125, %v418_v1  ;;  %v502_v60 = vmul.f32 %v1684_v0, %v1684_v0  ;;  %v503_v13 = vmul.f32 %v1687_v10, %v1687_v10 }
 0x1a4   :  { %v1694_v62 = vsub.f32 %v1538_v14, %v454_v32  ;;  %552 = vadd.xlane.f32.xlu1 %v505_v11  ;;  %546 = vadd.xlane.f32.xlu0 %v502_v60  ;;  %v1699_v19 = vsub.f32 %v1543_v15, %v455_v59 }
 0x1a5   :  { %v424_v12 = vpop.xlane.xlu1 %423  ;;  %v422_v40 = vpop.xlane.xlu0 %421 }
 0x1a6   :  { %v457_v22 = vmul.f32 0.0078125, %v424_v12  ;;  %v456_v3 = vmul.f32 0.0078125, %v422_v40  ;;  %v518_v23 = vmul.f32 %v1694_v62, %v1694_v62  ;;  %v519_v27 = vmul.f32 %v1699_v19, %v1699_v19 }
 0x1a8   :  { %v1704_v4 = vsub.f32 %v1548_v16, %v456_v3  ;;  %548 = vadd.xlane.f32.xlu1 %v503_v13  ;;  %578 = vadd.xlane.f32.xlu0 %v518_v23  ;;  %v1707_v14 = vsub.f32 %v1551_v18, %v457_v22  ;;  %v1719_v13 = vld [vmem:[%s1836_s3] ss:$0 sm:$0xff]  ;;  %s1322_s3 = smov [#allocation2]  }
 0x1aa   :  { %v520_v15 = vmul.f32 %v1704_v4, %v1704_v4  ;;  %v521_v5 = vmul.f32 %v1707_v14, %v1707_v14 }
 0x1ac   :  { %580 = vadd.xlane.f32.xlu1 %v519_v27  ;;  %582 = vadd.xlane.f32.xlu0 %v520_v15 }
 0x1b0   :  { %584 = vadd.xlane.f32.xlu1 %v521_v5 }
 0x1fd   :  { %v527_v34 = vpop.xlane.xlu0 %526 }
 0x1fe   :  { %v588_v16 = vmul.f32 0.0078125, %v527_v34 }
 0x200   :  { %v620_v43 = vadd.f32 1e-06, %v588_v16 }
 0x201   :  { %v529_v17 = vpop.xlane.xlu1 %528  ;;  %v559_v20 = vpop.xlane.xlu0 %558 }
 0x202   :  { %1234 = vrsqrt.f32 %v620_v43  ;;  %v589_v18 = vmul.f32 0.0078125, %v529_v17  ;;  %v604_v51 = vmul.f32 0.0078125, %v559_v20  ;;  %v1726_v17 = vld [vmem:[%s1837_s4] ss:$0 sm:$0xff]  ;;  %s955_s4 = sshll.u32 %s1322_s3, 4  ;;  %s956_s4 = int_to_ptr.vmem [resolvable:$true] %s955_s4 }
 0x203   :  { %s1298_s29 = scalar_lea.vmem %s956_s4, 2048  ;;  %p1303_p1 = scmp.lt.s32.totalorder %s956_s4, %s956_s4 }
 0x204   :  { %v621_v39 = vadd.f32 1e-06, %v589_v18  ;;  %v636_v21 = vadd.f32 1e-06, %v604_v51  ;;  %p1299_p0 = scmp.ne.s32.totalorder %s956_s4, %s1298_s29  ;;  %p1304_p2 = scmp.lt.s32.totalorder %s1298_s29, %s1298_s29 }
 0x205   :  { %v561_v7 = vpop.xlane.xlu1 %560  ;;  %v523_v44 = vpop.xlane.xlu0 %522 }
 0x206   :  { %1236 = vrsqrt.f32 %v621_v39  ;;  %v605_v8 = vmul.f32 0.0078125, %v561_v7  ;;  %v586_v28 = vmul.f32 0.0078125, %v523_v44  ;;  %p1305_p3 = por %p1304_p2, %p1303_p1 }
 0x207   :  { %1238 = vrsqrt.f32 %v636_v21 }
 0x208   :  { %v637_v9 = vadd.f32 1e-06, %v605_v8  ;;  %v618_v49 = vadd.f32 1e-06, %v586_v28  ;;  %p1306_p4 = pnand %p1305_p3, %p1299_p0 }
 0x209   :  { %v525_v57 = vpop.xlane.xlu1 %524  ;;  %v555_v52 = vpop.xlane.xlu0 %554 }
 0x20a   :  { %1240 = vrsqrt.f32 %v637_v9  ;;  %v587_v55 = vmul.f32 0.0078125, %v525_v57  ;;  %v602_v1 = vmul.f32 0.0078125, %v555_v52 }
 0x20b   :  { %1242 = vrsqrt.f32 %v618_v49 }
 0x20c   :  { %v1235_v59 = vpop.eup %1234  ;;  %v619_v32 = vadd.f32 1e-06, %v587_v55  ;;  %v634_v11 = vadd.f32 1e-06, %v602_v1 }
 0x20d   :  { %v684_v60 = vmul.f32 %v1235_v59, %v1556_v25  ;;  %v557_v12 = vpop.xlane.xlu1 %556  ;;  %v535_v40 = vpop.xlane.xlu0 %534 }
 0x20e   :  { %1244 = vrsqrt.f32 %v619_v32  ;;  %v603_v22 = vmul.f32 0.0078125, %v557_v12  ;;  %v592_v3 = vmul.f32 0.0078125, %v535_v40 }
 0x20f   :  { %1246 = vrsqrt.f32 %v634_v11  ;;  %v722_v34 = vmul.f32 %v1719_v13, %v684_v60 }
 0x210   :  { %v1237_v23 = vpop.eup %1236  ;;  %v635_v27 = vadd.f32 1e-06, %v603_v22  ;;  %v624_v15 = vadd.f32 1e-06, %v592_v3 }
 0x211   :  { %v1239_v5 = vpop.eup %1238  ;;  %v685_v16 = vmul.f32 %v1237_v23, %v1564_v35  ;;  %v537_v25 = vpop.xlane.xlu1 %536  ;;  %v760_v35 = vadd.f32 %v1726_v17, %v722_v34 }
 0x212   :  { %v567_v43 = vpop.xlane.xlu0 %566  ;;  %v700_v20 = vmul.f32 %v1239_v5, %v1559_v30  ;;  %1248 = vrsqrt.f32 %v635_v27  ;;  %v593_v18 = vmul.f32 0.0078125, %v537_v25 }
 0x213   :  { %v608_v51 = vmul.f32 0.0078125, %v567_v43  ;;  %v723_v39 = vmul.f32 %v1719_v13, %v685_v16  ;;  %1250 = vrsqrt.f32 %v624_v15 }
 0x214   :  { %v1241_v21 = vpop.eup %1240  ;;  %v625_v7 = vadd.f32 1e-06, %v593_v18  ;;  %v738_v9 = vmul.f32 %v1719_v13, %v700_v20 }
 0x215   :  { %v640_v44 = vadd.f32 1e-06, %v608_v51  ;;  %v1243_v8 = vpop.eup %1242  ;;  %v761_v28 = vadd.f32 %v1726_v17, %v723_v39  ;;  %v701_v49 = vmul.f32 %v1241_v21, %v1574_v45  ;;  %v569_v57 = vpop.xlane.xlu1 %568 }
 0x216   :  { %v531_v30 = vpop.xlane.xlu0 %530  ;;  %v682_v52 = vmul.f32 %v1243_v8, %v1567_v36  ;;  %1252 = vrsqrt.f32 %v625_v7  ;;  %v609_v55 = vmul.f32 0.0078125, %v569_v57  ;;  %v776_v22 = vadd.f32 %v1726_v17, %v738_v9 }
 0x217   :  { %v1074_v1 = vpack.c.bf16 %v761_v28, %v760_v35  ;;  %v739_v59 = vmul.f32 %v1719_v13, %v701_v49  ;;  %1254 = vrsqrt.f32 %v640_v44  ;;  %v590_v32 = vmul.f32 0.0078125, %v531_v30 }
 0x218   :  { %v1245_v11 = vpop.eup %1244  ;;  %v720_v60 = vmul.f32 %v1719_v13, %v682_v52  ;;  %v641_v12 = vadd.f32 1e-06, %v609_v55 }
 0x219   :  { %v1247_v40 = vpop.eup %1246  ;;  %1146 = vst [vmem:[#allocation2 + $0x8] sm:$0xff] %v1074_v1   ;;  %v777_v45 = vadd.f32 %v1726_v17, %v739_v59  ;;  %v683_v3 = vmul.f32 %v1245_v11, %v1584_v53  ;;  %v622_v36 = vadd.f32 1e-06, %v590_v32  ;;  %v533_v23 = vpop.xlane.xlu1 %532 }
 0x21a   :  { %v563_v27 = vpop.xlane.xlu0 %562  ;;  %v698_v15 = vmul.f32 %v1247_v40, %v1579_v47  ;;  %1256 = vrsqrt.f32 %v641_v12  ;;  %v591_v5 = vmul.f32 0.0078125, %v533_v23  ;;  %v758_v20 = vadd.f32 %v1726_v17, %v720_v60 }
 0x21b   :  { %v1114_v34 = vpack.c.bf16 %v777_v45, %v776_v22  ;;  %v721_v16 = vmul.f32 %v1719_v13, %v683_v3  ;;  %1258 = vrsqrt.f32 %v622_v36  ;;  %v606_v25 = vmul.f32 0.0078125, %v563_v27 }
 0x21c   :  { %v1249_v43 = vpop.eup %1248  ;;  %v623_v18 = vadd.f32 1e-06, %v591_v5  ;;  %v736_v39 = vmul.f32 %v1719_v13, %v698_v15 }
 0x21d   :  { %v1251_v51 = vpop.eup %1250  ;;  %1154 = vst [vmem:[#allocation2 + $0x48] sm:$0xff] %v1114_v34   ;;  %v759_v53 = vadd.f32 %v1726_v17, %v721_v16  ;;  %v699_v21 = vmul.f32 %v1249_v43, %v1587_v33  ;;  %v638_v47 = vadd.f32 1e-06, %v606_v25  ;;  %v565_v7 = vpop.xlane.xlu1 %564 }
 0x21e   :  { %v543_v44 = vpop.xlane.xlu0 %542  ;;  %v688_v8 = vmul.f32 %v1251_v51, %v1594_v61  ;;  %1260 = vrsqrt.f32 %v623_v18  ;;  %v607_v35 = vmul.f32 0.0078125, %v565_v7  ;;  %v774_v33 = vadd.f32 %v1726_v17, %v736_v39 }
 0x21f   :  { %v1069_v28 = vpack.c.bf16 %v759_v53, %v758_v20  ;;  %v737_v9 = vmul.f32 %v1719_v13, %v699_v21  ;;  %1262 = vrsqrt.f32 %v638_v47  ;;  %v596_v49 = vmul.f32 0.0078125, %v543_v44 }
 0x220   :  { %v1253_v57 = vpop.eup %1252  ;;  %v726_v30 = vmul.f32 %v1719_v13, %v688_v8  ;;  %v639_v52 = vadd.f32 1e-06, %v607_v35 }
 0x221   :  { %v1255_v55 = vpop.eup %1254  ;;  %1070 = vst [vmem:[#allocation2] sm:$0xff] %v1069_v28   ;;  %v775_v1 = vadd.f32 %v1726_v17, %v737_v9  ;;  %v689_v59 = vmul.f32 %v1253_v57, %v1599_v63  ;;  %v628_v61 = vadd.f32 1e-06, %v596_v49  ;;  %v545_v32 = vpop.xlane.xlu1 %544 }
 0x222   :  { %v575_v11 = vpop.xlane.xlu0 %574  ;;  %v704_v60 = vmul.f32 %v1255_v55, %v1604_v24  ;;  %1264 = vrsqrt.f32 %v639_v52  ;;  %v597_v12 = vmul.f32 0.0078125, %v545_v32  ;;  %v764_v36 = vadd.f32 %v1726_v17, %v726_v30 }
 0x223   :  { %v1109_v40 = vpack.c.bf16 %v775_v1, %v774_v33  ;;  %v727_v22 = vmul.f32 %v1719_v13, %v689_v59  ;;  %1266 = vrsqrt.f32 %v628_v61  ;;  %v612_v45 = vmul.f32 0.0078125, %v575_v11 }
 0x224   :  { %v1257_v3 = vpop.eup %1256  ;;  %v629_v23 = vadd.f32 1e-06, %v597_v12  ;;  %v742_v15 = vmul.f32 %v1719_v13, %v704_v60 }
 0x225   :  { %v1259_v27 = vpop.eup %1258  ;;  %1153 = vst [vmem:[#allocation2 + $0x40] sm:$0xff] %v1109_v40   ;;  %v765_v63 = vadd.f32 %v1726_v17, %v727_v22  ;;  %v705_v5 = vmul.f32 %v1257_v3, %v1607_v42  ;;  %v644_v24 = vadd.f32 1e-06, %v612_v45  ;;  %v577_v34 = vpop.xlane.xlu1 %576 }
 0x226   :  { %v539_v16 = vpop.xlane.xlu0 %538  ;;  %v686_v25 = vmul.f32 %v1259_v27, %v1614_v37  ;;  %1268 = vrsqrt.f32 %v629_v23  ;;  %v613_v43 = vmul.f32 0.0078125, %v577_v34  ;;  %v780_v42 = vadd.f32 %v1726_v17, %v742_v15 }
 0x227   :  { %v1084_v20 = vpack.c.bf16 %v765_v63, %v764_v36  ;;  %v743_v18 = vmul.f32 %v1719_v13, %v705_v5  ;;  %1270 = vrsqrt.f32 %v644_v24  ;;  %v594_v51 = vmul.f32 0.0078125, %v539_v16 }
 0x228   :  { %v1261_v53 = vpop.eup %1260  ;;  %v724_v39 = vmul.f32 %v1719_v13, %v686_v25  ;;  %v645_v21 = vadd.f32 1e-06, %v613_v43 }
 0x229   :  { %v1263_v47 = vpop.eup %1262  ;;  %1148 = vst [vmem:[#allocation2 + $0x18] sm:$0xff] %v1084_v20   ;;  %v781_v7 = vadd.f32 %v1726_v17, %v743_v18  ;;  %v687_v44 = vmul.f32 %v1261_v53, %v1619_v38  ;;  %v626_v37 = vadd.f32 1e-06, %v594_v51  ;;  %v541_v8 = vpop.xlane.xlu1 %540 }
 0x22a   :  { %v571_v35 = vpop.xlane.xlu0 %570  ;;  %v702_v28 = vmul.f32 %v1263_v47, %v1624_v29  ;;  %1272 = vrsqrt.f32 %v645_v21  ;;  %v595_v9 = vmul.f32 0.0078125, %v541_v8  ;;  %v762_v55 = vadd.f32 %v1726_v17, %v724_v39 }
 0x22b   :  { %v1124_v49 = vpack.c.bf16 %v781_v7, %v780_v42  ;;  %v725_v57 = vmul.f32 %v1719_v13, %v687_v44  ;;  %1274 = vrsqrt.f32 %v626_v37  ;;  %v610_v30 = vmul.f32 0.0078125, %v571_v35 }
 0x22c   :  { %v1265_v52 = vpop.eup %1264  ;;  %v627_v33 = vadd.f32 1e-06, %v595_v9  ;;  %v740_v59 = vmul.f32 %v1719_v13, %v702_v28 }
 0x22d   :  { %v1267_v1 = vpop.eup %1266  ;;  %1156 = vst [vmem:[#allocation2 + $0x58] sm:$0xff] %v1124_v49   ;;  %v763_v38 = vadd.f32 %v1726_v17, %v725_v57  ;;  %v703_v61 = vmul.f32 %v1265_v52, %v1627_v56  ;;  %v642_v29 = vadd.f32 1e-06, %v610_v30  ;;  %v573_v32 = vpop.xlane.xlu1 %572 }
 0x22e   :  { %v551_v11 = vpop.xlane.xlu0 %550  ;;  %v692_v60 = vmul.f32 %v1267_v1, %v1634_v54  ;;  %1276 = vrsqrt.f32 %v627_v33  ;;  %v611_v12 = vmul.f32 0.0078125, %v573_v32  ;;  %v778_v56 = vadd.f32 %v1726_v17, %v740_v59 }
 0x22f   :  { %v1079_v40 = vpack.c.bf16 %v763_v38, %v762_v55  ;;  %v741_v22 = vmul.f32 %v1719_v13, %v703_v61  ;;  %1278 = vrsqrt.f32 %v642_v29  ;;  %v600_v45 = vmul.f32 0.0078125, %v551_v11 }
 0x230   :  { %v1269_v3 = vpop.eup %1268  ;;  %v730_v36 = vmul.f32 %v1719_v13, %v692_v60  ;;  %v643_v23 = vadd.f32 1e-06, %v611_v12 }
 0x231   :  { %v1271_v27 = vpop.eup %1270  ;;  %1147 = vst [vmem:[#allocation2 + $0x10] sm:$0xff] %v1079_v40   ;;  %v779_v63 = vadd.f32 %v1726_v17, %v741_v22  ;;  %v693_v15 = vmul.f32 %v1269_v3, %v1639_v58  ;;  %v632_v54 = vadd.f32 1e-06, %v600_v45  ;;  %v553_v5 = vpop.xlane.xlu1 %552 }
 0x232   :  { %v547_v24 = vpop.xlane.xlu0 %546  ;;  %v708_v34 = vmul.f32 %v1271_v27, %v1644_v41  ;;  %1280 = vrsqrt.f32 %v643_v23  ;;  %v601_v16 = vmul.f32 0.0078125, %v553_v5  ;;  %v768_v51 = vadd.f32 %v1726_v17, %v730_v36 }
 0x233   :  { %v1119_v25 = vpack.c.bf16 %v779_v63, %v778_v56  ;;  %v731_v43 = vmul.f32 %v1719_v13, %v693_v15  ;;  %1282 = vrsqrt.f32 %v632_v54  ;;  %v598_v20 = vmul.f32 0.0078125, %v547_v24 }
 0x234   :  { %v1273_v18 = vpop.eup %1272  ;;  %v633_v53 = vadd.f32 1e-06, %v601_v16  ;;  %v746_v21 = vmul.f32 %v1719_v13, %v708_v34 }
 0x235   :  { %v1275_v39 = vpop.eup %1274  ;;  %1155 = vst [vmem:[#allocation2 + $0x50] sm:$0xff] %v1119_v25   ;;  %v769_v58 = vadd.f32 %v1726_v17, %v731_v43  ;;  %v709_v47 = vmul.f32 %v1273_v18, %v1647_v2  ;;  %v630_v41 = vadd.f32 1e-06, %v598_v20  ;;  %v549_v42 = vpop.xlane.xlu1 %548 }
 0x236   :  { %v579_v7 = vpop.xlane.xlu0 %578  ;;  %v690_v44 = vmul.f32 %v1275_v39, %v1654_v26  ;;  %1284 = vrsqrt.f32 %v633_v53  ;;  %v599_v37 = vmul.f32 0.0078125, %v549_v42  ;;  %v784_v2 = vadd.f32 %v1726_v17, %v746_v21 }
 0x237   :  { %v1094_v8 = vpack.c.bf16 %v769_v58, %v768_v51  ;;  %v747_v35 = vmul.f32 %v1719_v13, %v709_v47  ;;  %1286 = vrsqrt.f32 %v630_v41  ;;  %v614_v28 = vmul.f32 0.0078125, %v579_v7 }
 0x238   :  { %v1277_v9 = vpop.eup %1276  ;;  %v728_v49 = vmul.f32 %v1719_v13, %v690_v44  ;;  %v631_v57 = vadd.f32 1e-06, %v599_v37 }
 0x239   :  { %v1279_v30 = vpop.eup %1278  ;;  %1150 = vst [vmem:[#allocation2 + $0x28] sm:$0xff] %v1094_v8   ;;  %v785_v52 = vadd.f32 %v1726_v17, %v747_v35  ;;  %v691_v55 = vmul.f32 %v1277_v9, %v1659_v31  ;;  %v646_v26 = vadd.f32 1e-06, %v614_v28  ;;  %v581_v33 = vpop.xlane.xlu1 %580 }
 0x23a   :  { %v583_v1 = vpop.xlane.xlu0 %582  ;;  %v706_v38 = vmul.f32 %v1279_v30, %v1664_v50  ;;  %1288 = vrsqrt.f32 %v631_v57  ;;  %v615_v59 = vmul.f32 0.0078125, %v581_v33  ;;  %v766_v60 = vadd.f32 %v1726_v17, %v728_v49 }
 0x23b   :  { %v1134_v61 = vpack.c.bf16 %v785_v52, %v784_v2  ;;  %v729_v29 = vmul.f32 %v1719_v13, %v691_v55  ;;  %1290 = vrsqrt.f32 %v646_v26  ;;  %v616_v32 = vmul.f32 0.0078125, %v583_v1 }
 0x23c   :  { %v1281_v11 = vpop.eup %1280  ;;  %v647_v12 = vadd.f32 1e-06, %v615_v59  ;;  %v744_v22 = vmul.f32 %v1719_v13, %v706_v38 }
 0x23d   :  { %v1283_v40 = vpop.eup %1282  ;;  %1158 = vst [vmem:[#allocation2 + $0x68] sm:$0xff] %v1134_v61   ;;  %v767_v31 = vadd.f32 %v1726_v17, %v729_v29  ;;  %v707_v45 = vmul.f32 %v1281_v11, %v1667_v6  ;;  %v648_v50 = vadd.f32 1e-06, %v616_v32  ;;  %v585_v3 = vpop.xlane.xlu1 %584 }
 0x23e   :  { %v696_v36 = vmul.f32 %v1283_v40, %v1674_v46  ;;  %1292 = vrsqrt.f32 %v647_v12  ;;  %v617_v23 = vmul.f32 0.0078125, %v585_v3  ;;  %v782_v5 = vadd.f32 %v1726_v17, %v744_v22 }
 0x23f   :  { %v1089_v27 = vpack.c.bf16 %v767_v31, %v766_v60  ;;  %v745_v56 = vmul.f32 %v1719_v13, %v707_v45  ;;  %1294 = vrsqrt.f32 %v648_v50 }
 0x240   :  { %v1285_v63 = vpop.eup %1284  ;;  %v649_v15 = vadd.f32 1e-06, %v617_v23  ;;  %v734_v6 = vmul.f32 %v1719_v13, %v696_v36 }
 0x241   :  { %v1287_v54 = vpop.eup %1286  ;;  %1149 = vst [vmem:[#allocation2 + $0x20] sm:$0xff] %v1089_v27   ;;  %v783_v24 = vadd.f32 %v1726_v17, %v745_v56  ;;  %v697_v34 = vmul.f32 %v1285_v63, %v1679_v48 }
 0x242   :  { %v694_v46 = vmul.f32 %v1287_v54, %v1684_v0  ;;  %1296 = vrsqrt.f32 %v649_v15  ;;  %v772_v18 = vadd.f32 %v1726_v17, %v734_v6 }
 0x243   :  { %v1129_v16 = vpack.c.bf16 %v783_v24, %v782_v5  ;;  %v735_v25 = vmul.f32 %v1719_v13, %v697_v34 }
 0x244   :  { %v1289_v43 = vpop.eup %1288  ;;  %v732_v53 = vmul.f32 %v1719_v13, %v694_v46 }
 0x245   :  { %v1291_v20 = vpop.eup %1290  ;;  %1157 = vst [vmem:[#allocation2 + $0x60] sm:$0xff] %v1129_v16   ;;  %v773_v51 = vadd.f32 %v1726_v17, %v735_v25  ;;  %v695_v39 = vmul.f32 %v1289_v43, %v1687_v10 }
 0x246   :  { %v710_v58 = vmul.f32 %v1291_v20, %v1694_v62  ;;  %v770_v41 = vadd.f32 %v1726_v17, %v732_v53 }
 0x247   :  { %v1104_v48 = vpack.c.bf16 %v773_v51, %v772_v18  ;;  %v733_v0 = vmul.f32 %v1719_v13, %v695_v39 }
 0x248   :  { %v1293_v21 = vpop.eup %1292  ;;  %v748_v7 = vmul.f32 %v1719_v13, %v710_v58 }
 0x249   :  { %v1295_v47 = vpop.eup %1294  ;;  %1152 = vst [vmem:[#allocation2 + $0x38] sm:$0xff] %v1104_v48   ;;  %v771_v42 = vadd.f32 %v1726_v17, %v733_v0  ;;  %v711_v44 = vmul.f32 %v1293_v21, %v1699_v19 }
 0x24a   :  { %v712_v37 = vmul.f32 %v1295_v47, %v1704_v4  ;;  %v786_v35 = vadd.f32 %v1726_v17, %v748_v7 }
 0x24b   :  { %v1099_v8 = vpack.c.bf16 %v771_v42, %v770_v41  ;;  %v749_v10 = vmul.f32 %v1719_v13, %v711_v44 }
 0x24c   :  { %v1297_v62 = vpop.eup %1296  ;;  %v750_v9 = vmul.f32 %v1719_v13, %v712_v37 }
 0x24d   :  { %1151 = vst [vmem:[#allocation2 + $0x30] sm:$0xff] %v1099_v8   ;;  %v787_v28 = vadd.f32 %v1726_v17, %v749_v10  ;;  %v713_v49 = vmul.f32 %v1297_v62, %v1707_v14 }
 0x24e   :  { %v788_v19 = vadd.f32 %v1726_v17, %v750_v9 }
 0x24f   :  { %v1139_v57 = vpack.c.bf16 %v787_v28, %v786_v35  ;;  %v751_v30 = vmul.f32 %v1719_v13, %v713_v49 }
 0x251   :  { %1159 = vst [vmem:[#allocation2 + $0x70] sm:$0xff] %v1139_v57   ;;  %v789_v4 = vadd.f32 %v1726_v17, %v751_v30 }
 0x253   :  { %v1144_v2 = vpack.c.bf16 %v789_v4, %v788_v19 }
 0x255   :  { %1160 = vst [vmem:[#allocation2 + $0x78] sm:$0xff] %v1144_v2  }
 0x256   :  { %1309 = shalt.err (!%p1306_p4)
}
 0x257   :  { %s1310_s7 = scalar_lea.hbm %s1838_s5, 2048 }
 0x258   :  { %p1311_p5 = scmp.ne.s32.totalorder %s1838_s5, %s1310_s7  ;;  %p1314_p6 = scmp.lt.u32.totalorder %s1310_s7, %s1838_s5 }
 0x25a   :  { %p1316_p7 = pnand %p1314_p6, %p1311_p5 }
 0x25c   :  { %1319 = shalt.err (!%p1316_p7)
}
 0x25d   :  { %s1323_s12 = smov 64   ;;  %s1324_s13 = smov 4  }
 0x25e   :  { %961 = dma.vmem_to_hbm [thread:$0]  %s956_s4, 2048, %s1838_s5, [#allocation3], %s1323_s12, %s1323_s12, %s1324_s13  }
 0x25f   :  { %1320 = dma.done.wait [#allocation3], 2048  }
 0x260   :  { %1321 = vsyncadd [#allocation3], 4294965248 }
 0x261   :  { %965 = vsyncpa [#allocation3], 1 }

</bundles_post_ra>
